<compile_context>
chip_gen: v6e
topology: v6e:2x2x1
jax: 0.10.0
libtpu: 0.0.40
codegen_flags: <defaults>
</compile_context>

<pallas_src>
import functools
import math

import jax
import jax.numpy as jnp
from jax.experimental import pallas as pl
from jax.experimental.pallas import tpu as pltpu


def _leaky(v):
    return jnp.where(v > 0, v, 0.2 * v)


def _round_up(x, m):
    return (x + m - 1) // m * m


def resblock_kernel(x_ref, w1_ref, s1_ref, t1_ref,
                    w2_ref, s2_ref, t2_ref, ws_ref, bs_ref,
                    o_ref, *, rps, valid_len):
    # x_ref : (MB, Cin) bf16 slab chunk.  Rows r with (r % rps) in [1, valid_len]
    #         are real data; the rest are zero pad rows (their outputs are
    #         discarded by the wrapper).
    # w1_ref: (3*Cin, Cin) bf16    w2_ref: (3*Cin, Cout) bf16   ws_ref: (Cin, Cout) bf16
    # s*/t*/bs: (1, C) f32 broadcast rows.        o_ref: (MB, Cout) f32.
    mb = x_ref.shape[0]
    x = x_ref[...]
    xf = x.astype(jnp.float32)

    # im2col for conv1: rows r-1 / r / r+1 via sublane rolls (done in f32 for
    # layout friendliness; wrap rows only affect discarded pad-row outputs).
    xm1 = pltpu.roll(xf, 1, 0)            # row r-1
    xp1 = pltpu.roll(xf, mb - 1, 0)       # row r+1
    xcat = jnp.concatenate([xm1, xf, xp1], axis=-1).astype(x.dtype)   # (MB, 3*Cin)

    # conv1 (k=3, Cin->Cin) + folded BN/bias + LeakyReLU (f32 element-wise).
    y1 = jnp.dot(xcat, w1_ref[...], preferred_element_type=jnp.float32)
    y1 = _leaky(y1 * s1_ref[...] + t1_ref[...])

    # Zero the per-sample pad rows so conv2 sees a properly zero-padded input.
    row = jax.lax.broadcasted_iota(jnp.int32, (mb, 1), 0) % rps
    valid = jnp.logical_and(row >= 1, row <= valid_len)
    y1 = jnp.where(valid, y1, 0.0)

    y1m1 = pltpu.roll(y1, 1, 0)
    y1p1 = pltpu.roll(y1, mb - 1, 0)
    ycat = jnp.concatenate([y1m1, y1, y1p1], axis=-1).astype(x.dtype)  # (MB, 3*Cin)

    # conv2 (k=3, Cin->Cout) + folded BN/bias (1/sqrt(2) already folded) + LeakyReLU.
    y2 = jnp.dot(ycat, w2_ref[...], preferred_element_type=jnp.float32)
    y2 = _leaky(y2 * s2_ref[...] + t2_ref[...])

    # 1x1 skip conv (1/sqrt(2) folded into ws/bs).
    skip = jnp.dot(x, ws_ref[...], preferred_element_type=jnp.float32) + bs_ref[...]

    o_ref[...] = (y2 + skip).astype(o_ref.dtype)


@functools.partial(jax.jit, static_argnames=("upsample",))
def resblock_forward(x_ncl, kp, upsample=False):
    """x_ncl: (N, Cin, L) like the PyTorch module.  Returns (N, Cout, L_out) f32."""
    x = jnp.transpose(x_ncl, (0, 2, 1)).astype(jnp.float32)      # (N, L, Cin) channels-last
    if upsample:
        # TODO(synk): fold the nearest-neighbour upsample into the slab build
        # instead of materializing 2x activations.
        x = jnp.repeat(x, 2, axis=1)
    N, L, Cin = x.shape
    Cout = kp["ws"].shape[1]

    # Pack the batch into the matmul M dimension: RPS rows per sample
    # (1 leading zero row, L real rows, trailing zero rows), 16-aligned for bf16.
    rps = _round_up(L + 2, 16)

    # Samples per grid step: biggest chunk under a small VMEM budget, but keep
    # >= 2 grid steps when possible so both v7x TensorCores get work.
    bytes_per_sample = rps * (2 * Cin + 2 * 3 * Cin + 4 * Cout)   # bf16 in + im2col + f32 out
    nb = max(1, min(N, (8 * 1024 * 1024) // max(1, 2 * bytes_per_sample)))
    if N >= 2:
        nb = min(nb, -(-N // 2))
    num_chunks = -(-N // nb)
    n_pad = num_chunks * nb
    mb = nb * rps

    slab = jnp.pad(x, ((0, n_pad - N), (1, rps - L - 1), (0, 0)))
    slab = slab.reshape(n_pad * rps, Cin).astype(jnp.bfloat16)

    kernel = functools.partial(resblock_kernel, rps=rps, valid_len=L)
    out_slab = pl.pallas_call(
        kernel,
        out_shape=jax.ShapeDtypeStruct((n_pad * rps, Cout), jnp.float32),
        grid_spec=pltpu.PrefetchScalarGridSpec(
            num_scalar_prefetch=0,
            grid=(num_chunks,),
            in_specs=[
                pl.BlockSpec((mb, Cin),       lambda i: (i, 0)),   # x slab chunk (bf16)
                pl.BlockSpec((3 * Cin, Cin),  lambda i: (0, 0)),   # w1 (im2col, bf16)
                pl.BlockSpec((1, Cin),        lambda i: (0, 0)),   # s1
                pl.BlockSpec((1, Cin),        lambda i: (0, 0)),   # t1 (bias folded)
                pl.BlockSpec((3 * Cin, Cout), lambda i: (0, 0)),   # w2 (im2col, bf16)
                pl.BlockSpec((1, Cout),       lambda i: (0, 0)),   # s2 (1/sqrt2 folded)
                pl.BlockSpec((1, Cout),       lambda i: (0, 0)),   # t2
                pl.BlockSpec((Cin, Cout),     lambda i: (0, 0)),   # ws (1/sqrt2 folded, bf16)
                pl.BlockSpec((1, Cout),       lambda i: (0, 0)),   # bs
            ],
            out_specs=pl.BlockSpec((mb, Cout), lambda i: (i, 0)),
        ),
        compiler_params=pltpu.CompilerParams(
            dimension_semantics=("parallel",),
            vmem_limit_bytes=32 * 1024 * 1024,
        ),
    )(slab, kp["w1"], kp["s1"], kp["t1"],
      kp["w2"], kp["s2"], kp["t2"], kp["ws"], kp["bs"])

    out = out_slab.reshape(n_pad, rps, Cout)[:N, 1:L + 1, :]      # drop pad rows / pad samples
    return jnp.transpose(out, (0, 2, 1))                          # back to (N, Cout, L)


def init_raw_params(key, in_channels, out_channels):
    """Deterministic synthetic PyTorch-style params (conv weights as (K, Cin, Cout))."""
    ks = jax.random.split(key, 14)

    def bn(kg, kb, km, kv, c):
        return dict(gamma=1.0 + 0.1 * jax.random.normal(kg, (c,), jnp.float32),
                    beta=0.1 * jax.random.normal(kb, (c,), jnp.float32),
                    mean=0.1 * jax.random.normal(km, (c,), jnp.float32),
                    var=1.0 + 0.1 * jax.random.uniform(kv, (c,), jnp.float32))

    return dict(
        w1=0.1 * jax.random.normal(ks[0], (3, in_channels, in_channels), jnp.float32),
        b1=0.1 * jax.random.normal(ks[1], (in_channels,), jnp.float32),
        bn1=bn(ks[2], ks[3], ks[4], ks[5], in_channels),
        w2=0.1 * jax.random.normal(ks[6], (3, in_channels, out_channels), jnp.float32),
        b2=0.1 * jax.random.normal(ks[7], (out_channels,), jnp.float32),
        bn2=bn(ks[8], ks[9], ks[10], ks[11], out_channels),
        ws=0.1 * jax.random.normal(ks[12], (in_channels, out_channels), jnp.float32),
        bs=0.1 * jax.random.normal(ks[13], (out_channels,), jnp.float32),
    )


def prepare_params(raw, eps=1e-5):
    """Fold eval-mode BN, conv biases and the final 1/sqrt(2); im2col-reshape the
    k=3 weights and cast matmul operands to bf16."""
    def fold(b):
        s = b["gamma"] * jax.lax.rsqrt(b["var"] + eps)
        return s, b["beta"] - b["mean"] * s

    s1, t1 = fold(raw["bn1"])
    t1 = t1 + raw["b1"] * s1
    s2, t2 = fold(raw["bn2"])
    t2 = t2 + raw["b2"] * s2
    inv = 1.0 / math.sqrt(2.0)
    s2, t2 = s2 * inv, t2 * inv                  # LeakyReLU(a*v) = a*LeakyReLU(v), a > 0
    cin = raw["w1"].shape[1]
    cout = raw["w2"].shape[2]
    return dict(
        w1=raw["w1"].reshape(3 * cin, cin).astype(jnp.bfloat16),
        s1=s1[None, :].astype(jnp.float32), t1=t1[None, :].astype(jnp.float32),
        w2=raw["w2"].reshape(3 * cin, cout).astype(jnp.bfloat16),
        s2=s2[None, :].astype(jnp.float32), t2=t2[None, :].astype(jnp.float32),
        ws=(raw["ws"] * inv).astype(jnp.bfloat16),
        bs=((raw["bs"] * inv)[None, :]).astype(jnp.float32),
    )


def resblock_reference_f32(x_ncl, raw, upsample=False, eps=1e-5):
    """Pure-JAX f32 replica of the PyTorch module (eval-mode BN, p=0)."""
    x = jnp.transpose(x_ncl, (0, 2, 1)).astype(jnp.float32)
    if upsample:
        x = jnp.repeat(x, 2, axis=1)
    L = x.shape[1]

    def conv3(z, w, b):
        zp = jnp.pad(z, ((0, 0), (1, 1), (0, 0)))
        return sum(jnp.einsum("nlc,cd->nld", zp[:, k:k + L, :], w[k]) for k in range(3)) + b

    def bn(z, p):
        return (z - p["mean"]) * (p["gamma"] * jax.lax.rsqrt(p["var"] + eps)) + p["beta"]

    y1 = _leaky(bn(conv3(x, raw["w1"], raw["b1"]), raw["bn1"]))
    y2 = _leaky(bn(conv3(y1, raw["w2"], raw["b2"]), raw["bn2"]))
    skip = jnp.einsum("nlc,cd->nld", x, raw["ws"]) + raw["bs"]
    return jnp.transpose((y2 + skip) / math.sqrt(2.0), (0, 2, 1))


def resblock_reference_folded(x_ncl, kp, upsample=False):
    """Mirrors the kernel math exactly (folded params, bf16 matmul operands)."""
    x = jnp.transpose(x_ncl, (0, 2, 1)).astype(jnp.float32)
    if upsample:
        x = jnp.repeat(x, 2, axis=1)
    L = x.shape[1]

    def conv3cat(z, wcat):
        zp = jnp.pad(z, ((0, 0), (1, 1), (0, 0))).astype(jnp.bfloat16)
        zcat = jnp.concatenate([zp[:, 0:L], zp[:, 1:L + 1], zp[:, 2:L + 2]], axis=-1)
        return jnp.einsum("nlc,cd->nld", zcat, wcat, preferred_element_type=jnp.float32)

    xb = x.astype(jnp.bfloat16)
    y1 = _leaky(conv3cat(x, kp["w1"]) * kp["s1"] + kp["t1"])
    y2 = _leaky(conv3cat(y1, kp["w2"]) * kp["s2"] + kp["t2"])
    skip = jnp.einsum("nlc,cd->nld", xb, kp["ws"], preferred_element_type=jnp.float32) + kp["bs"]
    return jnp.transpose(y2 + skip, (0, 2, 1))


if __name__ == "__main__":
    N, Cin, Cout, L = 2, 32, 64, 16
    key = jax.random.PRNGKey(0)
    kx, kparams_key = jax.random.split(key)
    x = jax.random.normal(kx, (N, Cin, L), jnp.float32)          # PyTorch NCL input

    raw = init_raw_params(kparams_key, Cin, Cout)
    kparams = prepare_params(raw)

    out = resblock_forward(x, kparams, upsample=False)
    out = jax.block_until_ready(out)
    assert out.shape == (N, Cout, L)

    # Tight check vs. a reference that mirrors the kernel's folded/bf16 math.
    ref_folded = resblock_reference_folded(x, kparams, upsample=False)
    assert jnp.allclose(out, ref_folded, rtol=1e-3, atol=1e-3), "mismatch vs folded/bf16 reference"

    # Loose sanity check vs. full-f32 PyTorch semantics (bounds bf16 error).
    ref_f32 = resblock_reference_f32(x, raw, upsample=False)
    assert jnp.allclose(out, ref_f32, rtol=5e-2, atol=5e-2), "mismatch vs f32 PyTorch-semantics reference"

    print("KERNEL_OK")
</pallas_src>

<mosaic_0001>
module attributes {stable_mosaic.version = 11 : i64} {
  func.func @resblock_kernel(%arg0: i32, %arg1: memref<32x32xbf16, #tpu.memory_space<vmem>>, %arg2: memref<96x32xbf16, #tpu.memory_space<vmem>>, %arg3: memref<1x32xf32, #tpu.memory_space<vmem>>, %arg4: memref<1x32xf32, #tpu.memory_space<vmem>>, %arg5: memref<96x64xbf16, #tpu.memory_space<vmem>>, %arg6: memref<1x64xf32, #tpu.memory_space<vmem>>, %arg7: memref<1x64xf32, #tpu.memory_space<vmem>>, %arg8: memref<32x64xbf16, #tpu.memory_space<vmem>>, %arg9: memref<1x64xf32, #tpu.memory_space<vmem>>, %arg10: memref<32x64xf32, #tpu.memory_space<vmem>>) attributes {dimension_semantics = [#tpu.dimension_semantics<parallel>], iteration_bounds = array<i64: 2>, scalar_prefetch = 0 : i64, scratch_operands = 0 : i64, tpu.core_type = #tpu.core_type<tc>, window_params = [{transform_indices = @transform_0, window_bounds = array<i64: 32, 32>}, {pipeline_mode = #tpu.pipeline_mode<synchronous>, transform_indices = @transform_1, window_bounds = array<i64: 96, 32>}, {pipeline_mode = #tpu.pipeline_mode<synchronous>, transform_indices = @transform_2, window_bounds = array<i64: 1, 32>}, {pipeline_mode = #tpu.pipeline_mode<synchronous>, transform_indices = @transform_3, window_bounds = array<i64: 1, 32>}, {pipeline_mode = #tpu.pipeline_mode<synchronous>, transform_indices = @transform_4, window_bounds = array<i64: 96, 64>}, {pipeline_mode = #tpu.pipeline_mode<synchronous>, transform_indices = @transform_5, window_bounds = array<i64: 1, 64>}, {pipeline_mode = #tpu.pipeline_mode<synchronous>, transform_indices = @transform_6, window_bounds = array<i64: 1, 64>}, {pipeline_mode = #tpu.pipeline_mode<synchronous>, transform_indices = @transform_7, window_bounds = array<i64: 32, 64>}, {pipeline_mode = #tpu.pipeline_mode<synchronous>, transform_indices = @transform_8, window_bounds = array<i64: 1, 64>}, {transform_indices = @transform_9, window_bounds = array<i64: 32, 64>}]} {
    %c0 = arith.constant 0 : index
    %c0_0 = arith.constant 0 : index
    %0 = vector.load %arg1[%c0, %c0_0] : memref<32x32xbf16, #tpu.memory_space<vmem>>, vector<32x32xbf16>
    %1 = arith.extf %0 : vector<32x32xbf16> to vector<32x32xf32>
    %c1_i32 = arith.constant 1 : i32
    %2 = tpu.dynamic_rotate %1 by %c1_i32 dim 0 : vector<32x32xf32>, i32 -> vector<32x32xf32>
    %c31_i32 = arith.constant 31 : i32
    %3 = tpu.dynamic_rotate %1 by %c31_i32 dim 0 : vector<32x32xf32>, i32 -> vector<32x32xf32>
    %4 = tpu.concatenate %2, %1, %3 in 1 : vector<32x32xf32>, vector<32x32xf32>, vector<32x32xf32> -> vector<32x96xf32>
    %5 = arith.truncf %4 : vector<32x96xf32> to vector<32x96xbf16>
    %c0_1 = arith.constant 0 : index
    %c0_2 = arith.constant 0 : index
    %6 = vector.load %arg2[%c0_1, %c0_2] : memref<96x32xbf16, #tpu.memory_space<vmem>>, vector<96x32xbf16>
    %cst = arith.constant dense<0.000000e+00> : vector<32x32xf32>
    %7 = tpu.matmul %5, %6, %cst {dimension_numbers = #tpu.dot_dimension_numbers<[1], [0], [0], [1], [0, 0, 1, 1], [], []>} : vector<32x96xbf16>, vector<96x32xbf16>, vector<32x32xf32> -> vector<32x32xf32>
    %c0_3 = arith.constant 0 : index
    %c0_4 = arith.constant 0 : index
    %8 = vector.load %arg3[%c0_3, %c0_4] : memref<1x32xf32, #tpu.memory_space<vmem>>, vector<1x32xf32>
    %9 = vector.broadcast %8 : vector<1x32xf32> to vector<32x32xf32>
    %10 = arith.mulf %7, %9 : vector<32x32xf32>
    %c0_5 = arith.constant 0 : index
    %c0_6 = arith.constant 0 : index
    %11 = vector.load %arg4[%c0_5, %c0_6] : memref<1x32xf32, #tpu.memory_space<vmem>>, vector<1x32xf32>
    %12 = vector.broadcast %11 : vector<1x32xf32> to vector<32x32xf32>
    %13 = arith.addf %10, %12 : vector<32x32xf32>
    %cst_7 = arith.constant 0.000000e+00 : f32
    %14 = vector.broadcast %cst_7 : f32 to vector<32x32xf32>
    %15 = arith.cmpf ogt, %13, %14 : vector<32x32xf32>
    %cst_8 = arith.constant 2.000000e-01 : f32
    %16 = vector.broadcast %cst_8 : f32 to vector<32x32xf32>
    %17 = arith.mulf %16, %13 : vector<32x32xf32>
    %18 = arith.select %15, %13, %17 : vector<32x32xi1>, vector<32x32xf32>
    %19 = tpu.iota {dimensions = array<i32: 0>} : vector<32x1xi32>
    %c32_i32 = arith.constant 32 : i32
    %c0_i32 = arith.constant 0 : i32
    %20 = arith.cmpi eq, %c32_i32, %c0_i32 : i32
    %c1_i32_9 = arith.constant 1 : i32
    %21 = arith.select %20, %c1_i32_9, %c32_i32 : i32
    %22 = vector.broadcast %21 : i32 to vector<32x1xi32>
    %23 = arith.remsi %19, %22 : vector<32x1xi32>
    %c0_i32_10 = arith.constant 0 : i32
    %24 = vector.broadcast %c0_i32_10 : i32 to vector<32x1xi32>
    %25 = arith.cmpi ne, %23, %24 : vector<32x1xi32>
    %c0_i32_11 = arith.constant 0 : i32
    %26 = vector.broadcast %c0_i32_11 : i32 to vector<32x1xi32>
    %27 = arith.cmpi slt, %23, %26 : vector<32x1xi32>
    %c0_i32_12 = arith.constant 0 : i32
    %28 = arith.cmpi slt, %21, %c0_i32_12 : i32
    %29 = vector.broadcast %28 : i1 to vector<32x1xi1>
    %30 = vector.broadcast %29 : vector<32x1xi1> to vector<32x1xi1>
    %31 = arith.xori %27, %30 : vector<32x1xi1>
    %32 = arith.andi %31, %25 : vector<32x1xi1>
    %33 = vector.broadcast %21 : i32 to vector<32x1xi32>
    %34 = arith.addi %23, %33 : vector<32x1xi32>
    %35 = arith.select %32, %34, %23 : vector<32x1xi1>, vector<32x1xi32>
    %c1_i32_13 = arith.constant 1 : i32
    %36 = vector.broadcast %c1_i32_13 : i32 to vector<32x1xi32>
    %37 = arith.cmpi sge, %35, %36 : vector<32x1xi32>
    %c16_i32 = arith.constant 16 : i32
    %38 = vector.broadcast %c16_i32 : i32 to vector<32x1xi32>
    %39 = arith.cmpi sle, %35, %38 : vector<32x1xi32>
    %40 = arith.andi %37, %39 : vector<32x1xi1>
    %cst_14 = arith.constant 0.000000e+00 : f32
    %41 = vector.shape_cast %40 : vector<32x1xi1> to vector<32x1xi1>
    %42 = vector.broadcast %41 : vector<32x1xi1> to vector<32x32xi1>
    %43 = vector.broadcast %cst_14 : f32 to vector<32x32xf32>
    %44 = arith.select %42, %18, %43 : vector<32x32xi1>, vector<32x32xf32>
    %c1_i32_15 = arith.constant 1 : i32
    %45 = tpu.dynamic_rotate %44 by %c1_i32_15 dim 0 : vector<32x32xf32>, i32 -> vector<32x32xf32>
    %c31_i32_16 = arith.constant 31 : i32
    %46 = tpu.dynamic_rotate %44 by %c31_i32_16 dim 0 : vector<32x32xf32>, i32 -> vector<32x32xf32>
    %47 = tpu.concatenate %45, %44, %46 in 1 : vector<32x32xf32>, vector<32x32xf32>, vector<32x32xf32> -> vector<32x96xf32>
    %48 = arith.truncf %47 : vector<32x96xf32> to vector<32x96xbf16>
    %c0_17 = arith.constant 0 : index
    %c0_18 = arith.constant 0 : index
    %49 = vector.load %arg5[%c0_17, %c0_18] : memref<96x64xbf16, #tpu.memory_space<vmem>>, vector<96x64xbf16>
    %cst_19 = arith.constant dense<0.000000e+00> : vector<32x64xf32>
    %50 = tpu.matmul %48, %49, %cst_19 {dimension_numbers = #tpu.dot_dimension_numbers<[1], [0], [0], [1], [0, 0, 1, 1], [], []>} : vector<32x96xbf16>, vector<96x64xbf16>, vector<32x64xf32> -> vector<32x64xf32>
    %c0_20 = arith.constant 0 : index
    %c0_21 = arith.constant 0 : index
    %51 = vector.load %arg6[%c0_20, %c0_21] : memref<1x64xf32, #tpu.memory_space<vmem>>, vector<1x64xf32>
    %52 = vector.broadcast %51 : vector<1x64xf32> to vector<32x64xf32>
    %53 = arith.mulf %50, %52 : vector<32x64xf32>
    %c0_22 = arith.constant 0 : index
    %c0_23 = arith.constant 0 : index
    %54 = vector.load %arg7[%c0_22, %c0_23] : memref<1x64xf32, #tpu.memory_space<vmem>>, vector<1x64xf32>
    %55 = vector.broadcast %54 : vector<1x64xf32> to vector<32x64xf32>
    %56 = arith.addf %53, %55 : vector<32x64xf32>
    %cst_24 = arith.constant 0.000000e+00 : f32
    %57 = vector.broadcast %cst_24 : f32 to vector<32x64xf32>
    %58 = arith.cmpf ogt, %56, %57 : vector<32x64xf32>
    %cst_25 = arith.constant 2.000000e-01 : f32
    %59 = vector.broadcast %cst_25 : f32 to vector<32x64xf32>
    %60 = arith.mulf %59, %56 : vector<32x64xf32>
    %61 = arith.select %58, %56, %60 : vector<32x64xi1>, vector<32x64xf32>
    %c0_26 = arith.constant 0 : index
    %c0_27 = arith.constant 0 : index
    %62 = vector.load %arg8[%c0_26, %c0_27] : memref<32x64xbf16, #tpu.memory_space<vmem>>, vector<32x64xbf16>
    %cst_28 = arith.constant dense<0.000000e+00> : vector<32x64xf32>
    %63 = tpu.matmul %0, %62, %cst_28 {dimension_numbers = #tpu.dot_dimension_numbers<[1], [0], [0], [1], [0, 0, 1, 1], [], []>} : vector<32x32xbf16>, vector<32x64xbf16>, vector<32x64xf32> -> vector<32x64xf32>
    %c0_29 = arith.constant 0 : index
    %c0_30 = arith.constant 0 : index
    %64 = vector.load %arg9[%c0_29, %c0_30] : memref<1x64xf32, #tpu.memory_space<vmem>>, vector<1x64xf32>
    %65 = vector.broadcast %64 : vector<1x64xf32> to vector<32x64xf32>
    %66 = arith.addf %63, %65 : vector<32x64xf32>
    %67 = arith.addf %61, %66 : vector<32x64xf32>
    %c0_31 = arith.constant 0 : index
    %c0_32 = arith.constant 0 : index
    %68 = vector.load %arg10[%c0_31, %c0_32] : memref<32x64xf32, #tpu.memory_space<vmem>>, vector<32x64xf32>
    tpu.vector_store %arg10[%c0_31, %c0_32], %67 {strides = array<i32>} : memref<32x64xf32, #tpu.memory_space<vmem>>, vector<32x64xf32>,
    return
  }
  func.func @transform_0(%arg0: i32) -> (i32, i32) {
    %c0_i32 = arith.constant 0 : i32
    %c0_i32_0 = arith.constant 0 : i32
    return %arg0, %c0_i32 : i32, i32
  }
  func.func @transform_1(%arg0: i32) -> (i32, i32) {
    %c0_i32 = arith.constant 0 : i32
    %c0_i32_0 = arith.constant 0 : i32
    %c0_i32_1 = arith.constant 0 : i32
    return %c0_i32, %c0_i32_0 : i32, i32
  }
  func.func @transform_2(%arg0: i32) -> (i32, i32) {
    %c0_i32 = arith.constant 0 : i32
    %c0_i32_0 = arith.constant 0 : i32
    %c0_i32_1 = arith.constant 0 : i32
    return %c0_i32, %c0_i32_0 : i32, i32
  }
  func.func @transform_3(%arg0: i32) -> (i32, i32) {
    %c0_i32 = arith.constant 0 : i32
    %c0_i32_0 = arith.constant 0 : i32
    %c0_i32_1 = arith.constant 0 : i32
    return %c0_i32, %c0_i32_0 : i32, i32
  }
  func.func @transform_4(%arg0: i32) -> (i32, i32) {
    %c0_i32 = arith.constant 0 : i32
    %c0_i32_0 = arith.constant 0 : i32
    %c0_i32_1 = arith.constant 0 : i32
    return %c0_i32, %c0_i32_0 : i32, i32
  }
  func.func @transform_5(%arg0: i32) -> (i32, i32) {
    %c0_i32 = arith.constant 0 : i32
    %c0_i32_0 = arith.constant 0 : i32
    %c0_i32_1 = arith.constant 0 : i32
    return %c0_i32, %c0_i32_0 : i32, i32
  }
  func.func @transform_6(%arg0: i32) -> (i32, i32) {
    %c0_i32 = arith.constant 0 : i32
    %c0_i32_0 = arith.constant 0 : i32
    %c0_i32_1 = arith.constant 0 : i32
    return %c0_i32, %c0_i32_0 : i32, i32
  }
  func.func @transform_7(%arg0: i32) -> (i32, i32) {
    %c0_i32 = arith.constant 0 : i32
    %c0_i32_0 = arith.constant 0 : i32
    %c0_i32_1 = arith.constant 0 : i32
    return %c0_i32, %c0_i32_0 : i32, i32
  }
  func.func @transform_8(%arg0: i32) -> (i32, i32) {
    %c0_i32 = arith.constant 0 : i32
    %c0_i32_0 = arith.constant 0 : i32
    %c0_i32_1 = arith.constant 0 : i32
    return %c0_i32, %c0_i32_0 : i32, i32
  }
  func.func @transform_9(%arg0: i32) -> (i32, i32) {
    %c0_i32 = arith.constant 0 : i32
    %c0_i32_0 = arith.constant 0 : i32
    return %arg0, %c0_i32 : i32, i32
  }
}

</mosaic_0001>

<bundles_post_ra>
// kernel: resblock_forward.1
= control target key start
LH: loop header
LB: loop body
LE: loop exit
PB: predicated region body
PF: predicated region fallthrough
CT: control target
= control target key end

     0   :  { %s1197_s30 = smov 0   ;;  %s1363_s0 = inlined_call_operand.vmem [shape: bf16[64,32], index: 0, kind: input, shape index: {}]   ;;  %s1364_s1 = inlined_call_operand.vmem [shape: bf16[96,32], index: 1, kind: input, shape index: {}]   ;;  %s1365_s2 = inlined_call_operand.vmem [shape: f32[1,32], index: 2, kind: input, shape index: {}]   ;;  %s1366_s3 = inlined_call_operand.vmem [shape: f32[1,32], index: 3, kind: input, shape index: {}]   ;;  %s1367_s4 = inlined_call_operand.vmem [shape: bf16[96,64], index: 4, kind: input, shape index: {}]   ;;  %s1368_s5 = inlined_call_operand.vmem [shape: f32[1,64], index: 5, kind: input, shape index: {}]   ;;  %s1369_s6 = inlined_call_operand.vmem [shape: f32[1,64], index: 6, kind: input, shape index: {}]   ;;  %s1370_s7 = inlined_call_operand.vmem [shape: bf16[32,64], index: 7, kind: input, shape index: {}]   ;;  %s1371_s8 = inlined_call_operand.vmem [shape: f32[1,64], index: 8, kind: input, shape index: {}]   ;;  %s1372_s9 = inlined_call_operand.vmem [shape: f32[64,64], index: 9, kind: output, shape index: {}]  }
   0x1 LB: > { %s969_s10 = sadd.s32 4294967295, %s1142_s30   ;;  %p973_p0 = scmp.ge.s32.totalorder %s1142_s30, 1  ;;  %s1142_s30 = sphi %s1197_s30, %s19_s30  }
   0x2   : > { %p288_p1 = scmp.lt.s32.totalorder %s1142_s30, 3 }
   0x4   : > { %p289_p2 = pnand %p973_p0, %p288_p1 }
   0x5   : > { %s974_s11 = sshll.u32 (!%p289_p2), %s969_s10, 2  ;;  %s1144_s24 = smov (!%p289_p2), 32  }
   0x6   : > { %292 = sbr.rel (%p289_p2) target bundleno = 689 (0x2b1), region = 56  ;;  %p325_p3 = scmp.lt.s32.totalorder (!%p289_p2), %s974_s11, 7 }
   0x7   : > { %s1145_s27 = smov (!%p289_p2), 64  }
   0xb   : > { %v349_v0 = vlaneseq  ;;  %v1119_v1 = vld [vmem:[%s1364_s1 + $0x28] sm:$0xff]   ;;  %v1120_v2 = vld [vmem:[%s1364_s1 + $0x20] sm:$0xff]   ;;  %s1376_s11 = smov (!%p325_p3, %s974_s11), 7  ;;  %v1121_v4 = vld [vmem:[%s1364_s1 + $0x18] sm:$0xff]   ;;  %vm397_vm2 = vcmask 261120   ;;  %vm402_vm3 = vcmask 523264  }
   0xc   : > { %1027 = vmatprep.subr.bf16.mxu0 %v1119_v1  ;;  %s975_s16 = sshll.u32 %s1376_s11, 2  ;;  %v1122_v7 = vld [vmem:[%s1364_s1 + $0x10] sm:$0xff]   ;;  %v1123_v28 = vld [vmem:[%s1364_s1 + $0x8] sm:$0xff]   ;;  %v1124_v33 = vld [vmem:[%s1364_s1] sm:$0xff]   ;;  %vm457_vm4 = vcmask 785408   ;;  %s977_s18 = sshll.u32 %s1376_s11, 3 }
   0xd   : > { %v1213_v3 = vshrl.u32 %v349_v0, 7  ;;  %1028 = vmatpush3.bf16.msra.mxu0 %v1119_v1  ;;  %s328_s21 = scalar_lea.vmem %s1363_s0, %s975_s16  ;;  %v1125_v56 = vld [vmem:[%s1367_s4 + $0x28] sm:$0xff]   ;;  %v1126_v57 = vld [vmem:[%s1367_s4 + $0x20] sm:$0xff]   ;;  %v1127_v58 = vld [vmem:[%s1367_s4 + $0x18] sm:$0xff]  }
   0xe   : > { %1029 = vmatprep.subr.bf16.mxu0 %v1120_v2  ;;  %v1222_v5 = vld [vmem:[%s328_s21] sm:$0xff]   ;;  %v1224_v6 = vld [vmem:[%s328_s21 + $0x8] sm:$0xff]   ;;  %1043 = vmatprep.subr.bf16.mxu1 %v1125_v56  ;;  %v1128_v63 = vld [vmem:[%s1367_s4 + $0x10] sm:$0xff]   ;;  %s334_s21 = scalar_lea.vmem %s1372_s9, %s977_s18 }
   0xf   : > { %vm360_vm0 = vcmp.lt.s32.totalorder %v1213_v3, 7  ;;  %vm351_vm1 = vcmp.lt.s32.totalorder %v1213_v3, 1  ;;  %v341_v8 = vunpack.c.l.bf16 %v1222_v5  ;;  %v342_v9 = vunpack.c.h.bf16 %v1222_v5  ;;  %1044 = vmatpush3.bf16.msra.mxu1 %v1125_v56  ;;  %v986_v60 = vld [vmem:[%s1365_s2] ss:$0 sm:$0xff] }
  0x10   : > { %v343_v10 = vunpack.c.l.bf16 %v1224_v6  ;;  %v344_v11 = vunpack.c.h.bf16 %v1224_v6  ;;  %1045 = vmatprep.subr.bf16.mxu1 %v1126_v57  ;;  %v548_v59 = vadd.s32 16, %v1213_v3  ;;  %v987_v62 = vld [vmem:[%s1366_s3] ss:$0 sm:$0xff] }
  0x11   : > { %1030 = vmatpush3.bf16.msra.mxu0 %v1120_v2  ;;  %v346_v12 = vrot.slane %v342_v9, 7  ;;  %v1078_v13 = vpack.i.bf16 %v342_v9, %v341_v8  ;;  %v345_v14 = vrot.slane %v341_v8, 7  ;;  %v356_v15 = vrot.slane %v341_v8, 1 }
  0x12   : > { %1031 = vmatprep.subr.bf16.mxu0 %v1121_v4  ;;  %v357_v16 = vrot.slane %v342_v9, 1  ;;  %v358_v17 = vrot.slane %v343_v10, 1  ;;  %v359_v18 = vrot.slane %v344_v11, 1  ;;  %v1083_v19 = vpack.i.bf16 %v344_v11, %v343_v10  ;;  %v1129_v9 = vld [vmem:[%s1370_s7 + $0x8] sm:$0xff]  }
  0x13   : > { %1079 = vrot.lane.b32.xlu0 %v1078_v13, %s1144_s24  ;;  %v347_v20 = vrot.slane %v343_v10, 7  ;;  %v348_v21 = vrot.slane %v344_v11, 7  ;;  %v354_v22 = vsel %vm351_vm1, %v345_v14, %v346_v12  ;;  %1046 = vmatpush3.bf16.msra.mxu1 %v1126_v57  ;;  %v568_v1 = vand.u32 31, %v548_v59  ;;  %v1130_v11 = vld [vmem:[%s1367_s4 + $0x8] sm:$0xff]  }
  0x14   : > { %v362_v23 = vsel %vm360_vm0, %v357_v16, %v358_v17  ;;  %v363_v24 = vsel %vm360_vm0, %v356_v15, %v357_v16  ;;  %v361_v25 = vsel %vm360_vm0, %v358_v17, %v359_v18  ;;  %v364_v26 = vsel %vm360_vm0, %v359_v18, %v356_v15  ;;  %1047 = vmatprep.subr.bf16.mxu1 %v1127_v58 }
  0x15   : > { %1032 = vmatpush3.bf16.msra.mxu0 %v1121_v4  ;;  %v1088_v27 = vpack.i.bf16 %v362_v23, %v363_v24  ;;  %v352_v29 = vsel %vm351_vm1, %v347_v20, %v348_v21  ;;  %v353_v30 = vsel %vm351_vm1, %v346_v12, %v347_v20  ;;  %v355_v31 = vsel %vm351_vm1, %v348_v21, %v345_v14  ;;  %v1132_v20 = vld [vmem:[%s1367_s4] sm:$0xff]  }
  0x16   : > { %1033 = vmatprep.subr.bf16.mxu0 %v1122_v7  ;;  %v1093_v32 = vpack.i.bf16 %v364_v26, %v361_v25  ;;  %v554_v4 = vand.u32 31, %v1213_v3  ;;  %vm604_vm6 = vcmp.le.s32.totalorder %v568_v1, 16  ;;  %v1146_v24 = vmov 0.0   ;;  %v996_v3 = vld [vmem:[%s1368_s5] ss:$0 sm:$0xff] }
  0x17   : > { %1089 = vrot.lane.b32.xlu1 %v1088_v27, %s1145_s27  ;;  %1084 = vrot.lane.b32.xlu0 %v1083_v19, %s1144_s24  ;;  %v1131_v19 = vld [vmem:[%s1370_s7] sm:$0xff]   ;;  %v633_v25 = vrot.slane %v1146_v24, 1 }
  0x18   : > { %1048 = vmatpush3.bf16.msra.mxu1 %v1127_v58  ;;  %vm1297_vm7 = vcmp.ge.s32.totalorder %v554_v4, 1 }
  0x19   : > { %1034 = vmatpush3.bf16.msra.mxu0 %v1122_v7  ;;  %1049 = vmatprep.subr.bf16.mxu1 %v1128_v63 }
  0x1a   : > { %1035 = vmatprep.subr.bf16.mxu0 %v1123_v28 }
  0x1b   : > { %1094 = vrot.lane.b32.xlu1 %v1093_v32, %s1145_s27 }
  0x1c   : > { %1050 = vmatpush3.bf16.msra.mxu1 %v1128_v63 }
  0x1d   : > { %1036 = vmatpush3.bf16.msra.mxu0 %v1123_v28  ;;  %1051 = vmatprep.subr.bf16.mxu1 %v1130_v11 }
  0x1e   : > { %1037 = vmatprep.subr.bf16.mxu0 %v1124_v33 }
  0x20   : > { %1052 = vmatpush3.bf16.msra.mxu1 %v1130_v11 }
  0x21   : > { %1038 = vmatpush3.bf16.msra.mxu0 %v1124_v33  ;;  %1053 = vmatprep.subr.bf16.mxu1 %v1132_v20 }
  0x22   : > { %1059 = vmatprep.subr.bf16.mxu0 %v1129_v9 }
  0x24   : > { %1054 = vmatpush3.bf16.msra.mxu1 %v1132_v20 }
  0x85   : > { %v1080_v34 = vpop.permute.xlu0 %1079 }
  0x86   : > { %v1082_v35 = vunpack.i.h.bf16 %v1080_v34  ;;  %v1081_v36 = vunpack.i.l.bf16 %v1080_v34 }
  0x88   : > { %v398_v39 = vsel %vm397_vm2, %v355_v31, %v1081_v36  ;;  %v399_v40 = vsel %vm397_vm2, %v354_v22, %v1082_v35 }
  0x89   : > { %v1090_v37 = vpop.permute.xlu1 %1089  ;;  %v1085_v38 = vpop.permute.xlu0 %1084 }
  0x8a   : > { %v1092_v41 = vunpack.i.h.bf16 %v1090_v37  ;;  %v1091_v42 = vunpack.i.l.bf16 %v1090_v37  ;;  %v1087_v43 = vunpack.i.h.bf16 %v1085_v38  ;;  %v1086_v44 = vunpack.i.l.bf16 %v1085_v38 }
  0x8c   : > { %v403_v45 = vsel %vm402_vm3, %v398_v39, %v1091_v42  ;;  %v404_v46 = vsel %vm402_vm3, %v399_v40, %v1092_v41  ;;  %v401_v47 = vsel %vm397_vm2, %v352_v29, %v1087_v43  ;;  %v400_v48 = vsel %vm397_vm2, %v353_v30, %v1086_v44 }
  0x8d   : > { %v1095_v49 = vpop.permute.xlu1 %1094  ;;  %v407_v50 = vpack.c.bf16 %v404_v46, %v403_v45  ;;  %v625_v44 = vrot.slane %v1146_v24, 7 }
  0x8e   : > { %v1097_v51 = vunpack.i.h.bf16 %v1095_v49  ;;  %v1096_v52 = vunpack.i.l.bf16 %v1095_v49 }
  0x8f   : > { %1039 = vmatprep.mubr.msk.bf16.mxu0 %vm457_vm4, %v407_v50 }
  0x90   : > { %v406_v53 = vsel %vm402_vm3, %v401_v47, %v1097_v51  ;;  %v405_v54 = vsel %vm402_vm3, %v400_v48, %v1096_v52 }
  0x91   : > { %v408_v55 = vpack.c.bf16 %v406_v53, %v405_v54 }
  0x93   : > { %1040 = vmatmul.mubr.msk.bf16.vlgmr.msra.gmra.mxu0 %vm457_vm4, %v408_v55 }
  0x94   : > { %1060 = vmatpush3.bf16.msra.mxu0 %v1129_v9  ;;  %1063 = vmatprep.mubr.msk.bf16.mxu0 %vm397_vm2, %v1222_v5 }
  0x95   : > { %1061 = vmatprep.subr.bf16.mxu0 %v1131_v19 }
  0x98   : > { %1062 = vmatpush3.bf16.msra.mxu0 %v1131_v19 }
  0x9b   : > { %1064 = vmatmul.mubr.msk.bf16.vlgmr.msra.gmra.mxu0 %vm397_vm2, %v1224_v6 }
 0x153   : > { %v1041_v61 = vpop.f32.mrf.mxu0 }
 0x154   : > { %v522_v0 = vmul.f32 %v1041_v61, %v986_v60 }
 0x155   : > { %v498_v2 = vpop.f32.mrf.mxu0 }
 0x156   : > { %v533_v7 = vadd.f32 %v987_v62, %v522_v0  ;;  %v520_v8 = vmul.f32 %v986_v60, %v498_v2 }
 0x157   : > { %v1042_v10 = vpop.f32.mrf.mxu0 }
 0x158   : > { %vm537_vm5 = vcmp.gt.f32.partialorder %v533_v7, 0.0  ;;  %v541_v12 = vmul.f32 0.2, %v533_v7  ;;  %v531_v13 = vadd.f32 %v987_v62, %v520_v8  ;;  %v997_v10 = vld [vmem:[%s1369_s6] ss:$0 sm:$0xff] }
 0x159   : > { %v501_v15 = vpop.f32.mrf.mxu0 }
 0x15a   : > { %v545_v16 = vsel %vm537_vm5, %v533_v7, %v541_v12  ;;  %vm535_vm8 = vcmp.gt.f32.partialorder %v531_v13, 0.0  ;;  %v539_v17 = vmul.f32 0.2, %v531_v13  ;;  %v521_v18 = vmul.f32 %v986_v60, %v501_v15  ;;  %v998_v15 = vld [vmem:[%s1371_s8] ss:$0 sm:$0xff] }
 0x15b   : > { %v620_v21 = vsel %vm604_vm6, %v545_v16, 0.0  ;;  %v1065_v7 = vpop.f32.mrf.mxu0 }
 0x15c   : > { %v543_v22 = vsel %vm535_vm8, %v531_v13, %v539_v17  ;;  %v532_v23 = vadd.f32 %v987_v62, %v521_v18  ;;  %v1098_v26 = vpack.i.bf16 %v1146_v24, %v620_v21  ;;  %v632_v28 = vrot.slane %v620_v21, 1 }
 0x15d   : > { %v618_v27 = vsel %vm1297_vm7, %v543_v22, 0.0  ;;  %v624_v31 = vrot.slane %v620_v21, 7  ;;  %v890_v11 = vpop.f32.mrf.mxu0 }
 0x15e   : > { %vm536_vm9 = vcmp.gt.f32.partialorder %v532_v23, 0.0  ;;  %v540_v29 = vmul.f32 0.2, %v532_v23  ;;  %1099 = vrot.lane.b32.xlu1 %v1098_v26, %s1144_s24  ;;  %v630_v30 = vrot.slane %v618_v27, 1  ;;  %v634_v32 = vsel %vm360_vm0, %v632_v28, %v633_v25 }
 0x15f   : > { %v622_v38 = vrot.slane %v618_v27, 7  ;;  %v626_v49 = vsel %vm351_vm1, %v624_v31, %v625_v44  ;;  %v1066_v19 = vpop.f32.mrf.mxu0 }
 0x160   : > { %v637_v33 = vsel %vm360_vm0, %v633_v25, %v630_v30  ;;  %v544_v34 = vsel %vm536_vm9, %v532_v23, %v540_v29  ;;  %v891_v23 = vadd.f32 %v998_v15, %v890_v11 }
 0x161   : > { %v1113_v35 = vpack.i.bf16 %v637_v33, %v634_v32  ;;  %v1103_v36 = vpack.i.bf16 %v544_v34, %v618_v27  ;;  %v623_v5 = vrot.slane %v544_v34, 7  ;;  %v631_v37 = vrot.slane %v544_v34, 1  ;;  %v893_v29 = vpop.f32.mrf.mxu0 }
 0x162   : > { %v629_v62 = vsel %vm351_vm1, %v625_v44, %v622_v38  ;;  %v894_v34 = vadd.f32 %v998_v15, %v893_v29 }
 0x163   : > { %1114 = vrot.lane.b32.xlu1 %v1113_v35, %s1145_s27  ;;  %1104 = vrot.lane.b32.xlu0 %v1103_v36, %s1144_s24  ;;  %v635_v39 = vsel %vm360_vm0, %v631_v37, %v632_v28  ;;  %v636_v40 = vsel %vm360_vm0, %v630_v30, %v631_v37  ;;  %v627_v41 = vsel %vm351_vm1, %v623_v5, %v624_v31 }
 0x164   : > { %v1108_v42 = vpack.i.bf16 %v635_v39, %v636_v40  ;;  %v628_v6 = vsel %vm351_vm1, %v622_v38, %v623_v5  ;;  %v899_v31 = vadd.f32 %v1065_v7, %v998_v15  ;;  %v902_v5 = vadd.f32 %v1066_v19, %v998_v15 }
 0x167   : > { %1109 = vrot.lane.b32.xlu0 %v1108_v42, %s1145_s27 }
 0x1d0   : > { %v1100_v43 = vpop.permute.xlu1 %1099 }
 0x1d1   : > { %v1102_v45 = vunpack.i.h.bf16 %v1100_v43  ;;  %v1101_v46 = vunpack.i.l.bf16 %v1100_v43 }
 0x1d3   : > { %v672_v52 = vsel %vm397_vm2, %v627_v41, %v1101_v46  ;;  %v673_v53 = vsel %vm397_vm2, %v626_v49, %v1102_v45 }
 0x1d5   : > { %v1115_v47 = vpop.permute.xlu1 %1114  ;;  %v1105_v48 = vpop.permute.xlu0 %1104 }
 0x1d6   : > { %v1117_v50 = vunpack.i.h.bf16 %v1115_v47  ;;  %v1116_v51 = vunpack.i.l.bf16 %v1115_v47  ;;  %v1107_v54 = vunpack.i.h.bf16 %v1105_v48  ;;  %v1106_v55 = vunpack.i.l.bf16 %v1105_v48 }
 0x1d8   : > { %v677_v56 = vsel %vm402_vm3, %v673_v53, %v1117_v50  ;;  %v676_v57 = vsel %vm402_vm3, %v672_v52, %v1116_v51  ;;  %v670_v63 = vsel %vm397_vm2, %v629_v62, %v1106_v55  ;;  %v671_v0 = vsel %vm397_vm2, %v628_v6, %v1107_v54 }
 0x1d9   : > { %v679_v58 = vpack.c.bf16 %v677_v56, %v676_v57  ;;  %v1110_v59 = vpop.permute.xlu0 %1109 }
 0x1da   : > { %v1112_v60 = vunpack.i.h.bf16 %v1110_v59  ;;  %v1111_v61 = vunpack.i.l.bf16 %v1110_v59 }
 0x1dc   : > { %v674_v1 = vsel %vm402_vm3, %v670_v63, %v1111_v61  ;;  %v675_v2 = vsel %vm402_vm3, %v671_v0, %v1112_v60 }
 0x1dd   : > { %v678_v4 = vpack.c.bf16 %v675_v2, %v674_v1 }
 0x1df   : > { %1055 = vmatprep.mubr.msk.bf16.mxu1 %vm457_vm4, %v678_v4 }
 0x1e0   : > { %1056 = vmatmul.mubr.msk.bf16.vlgmr.msra.gmra.mxu1 %vm457_vm4, %v679_v58 }
 0x2a0   : > { %v1057_v8 = vpop.f32.mrf.mxu1 }
 0x2a1   : > { %v792_v9 = vmul.f32 %v1057_v8, %v996_v3 }
 0x2a2   : > { %v768_v12 = vpop.f32.mrf.mxu1 }
 0x2a3   : > { %v790_v13 = vmul.f32 %v996_v3, %v768_v12  ;;  %v803_v16 = vadd.f32 %v997_v10, %v792_v9 }
 0x2a4   : > { %v1058_v14 = vpop.f32.mrf.mxu1 }
 0x2a5   : > { %v801_v17 = vadd.f32 %v997_v10, %v790_v13  ;;  %v793_v18 = vmul.f32 %v1058_v14, %v996_v3  ;;  %v811_v25 = vmul.f32 0.2, %v803_v16  ;;  %vm807_vm11 = vcmp.gt.f32.partialorder %v803_v16, 0.0 }
 0x2a6   : > { %v771_v20 = vpop.f32.mrf.mxu1 }
 0x2a7   : > { %vm805_vm10 = vcmp.gt.f32.partialorder %v801_v17, 0.0  ;;  %v809_v21 = vmul.f32 0.2, %v801_v17  ;;  %v804_v22 = vadd.f32 %v997_v10, %v793_v18  ;;  %v791_v24 = vmul.f32 %v996_v3, %v771_v20 }
 0x2a8   : > { %v815_v33 = vsel %vm807_vm11, %v803_v16, %v811_v25 }
 0x2a9   : > { %v813_v26 = vsel %vm805_vm10, %v801_v17, %v809_v21  ;;  %v812_v28 = vmul.f32 0.2, %v804_v22  ;;  %v802_v30 = vadd.f32 %v997_v10, %v791_v24  ;;  %vm808_vm12 = vcmp.gt.f32.partialorder %v804_v22, 0.0 }
 0x2aa   : > { %v905_v27 = vadd.f32 %v891_v23, %v813_v26  ;;  %v907_v38 = vadd.f32 %v899_v31, %v815_v33 }
 0x2ab   : > { %vm806_vm13 = vcmp.gt.f32.partialorder %v802_v30, 0.0  ;;  %v810_v32 = vmul.f32 0.2, %v802_v30  ;;  %v816_v35 = vsel %vm808_vm12, %v804_v22, %v812_v28 }
 0x2ac   : > { %909 = vst.msk [vmem:[%s334_s21] sm:$0xff] %vm402_vm3, %v905_v27  ;;  %v908_v39 = vadd.f32 %v902_v5, %v816_v35  ;;  %911 = vst.msk [vmem:[%s334_s21 + $0x10] sm:$0xff] %vm402_vm3, %v907_v38 }
 0x2ad   : > { %v814_v36 = vsel %vm806_vm13, %v802_v30, %v810_v32 }
 0x2ae   : > { %v906_v37 = vadd.f32 %v894_v34, %v814_v36  ;;  %912 = vst.msk [vmem:[%s334_s21 + $0x18] sm:$0xff] %vm402_vm3, %v908_v39 }
 0x2b0   : > { %910 = vst.msk [vmem:[%s334_s21 + $0x8] sm:$0xff] %vm402_vm3, %v906_v37 }
 0x2b1 PF: > { %s19_s30 = sadd.s32 1, %s1142_s30  }
 0x2b2   : > { %p16_p4 = scmp.ge.s32.totalorder %s19_s30, 4  }
 0x2b4   :  { %18 = sbr.rel (!%p16_p4) target bundleno = 1 (0x1), region = 86 }

</bundles_post_ra>
